<compile_context>
chip_gen: v5e
topology: v5e:2x2
jax: 0.10.0
libtpu: 0.0.40
codegen_flags: <defaults>
</compile_context>

<pallas_src>
import functools

import jax
import jax.numpy as jnp
from jax import lax
from jax.experimental import pallas as pl
from jax.experimental.pallas import tpu as pltpu

LANES = 128
SUBLANES = 8
TARGET_BLOCK_BYTES = 4 * 1024 * 1024   # per-input block: 8192x128 f32 = 4 MiB
VMEM_LIMIT_BYTES = 32 * 1024 * 1024    # 2 inputs x 2 buffers x 4 MiB + headroom


def _num_tensorcores_per_chip() -> int:
    """2 on dual-TensorCore v7x, 1 on v5e/v6e.  Conservative default: 1."""
    try:
        kind = jax.devices()[0].device_kind.lower()
    except Exception:
        return 1
    return 2 if "v7" in kind else 1


def _ssd_kernel(x_ref, y_ref, o_ref, *, row_tile, rows, bps, num_blocks,
                needs_tail_mask):
    """Accumulate per-slice (8, 128) partial sums of (x - y)^2.

    The hot loop is pure VPU sub/mul/add.  The iota/compare/select tail mask is
    gated with pl.when so only the single partial trailing block pays for it.
    """
    p = pl.program_id(0)   # slice (sharded across TensorCores on v7x)
    i = pl.program_id(1)   # reduction step within the slice

    @pl.when(i == 0)
    def _():
        o_ref[...] = jnp.zeros_like(o_ref)

    d = x_ref[...].astype(jnp.float32) - y_ref[...].astype(jnp.float32)
    sq = d * d

    def _fold(v):
        # (row_tile, 128) -> (8, 128): one VPU add per vreg, no XLU work.
        return jnp.sum(v.reshape(row_tile // SUBLANES, SUBLANES, LANES), axis=0)

    if needs_tail_mask:
        blk = p * bps + i
        last = num_blocks - 1

        @pl.when(blk != last)
        def _():
            # Full block: unmasked fast path.
            o_ref[0] += _fold(sq)

        @pl.when(blk == last)
        def _():
            # Partial trailing block: rows past `rows` read undefined data
            # (Pallas OOB block padding); zero their contribution.
            base = blk * row_tile
            row_ids = base + lax.broadcasted_iota(jnp.int32, (row_tile, LANES), 0)
            o_ref[0] += _fold(jnp.where(row_ids < rows, sq, 0.0))
    else:
        o_ref[0] += _fold(sq)


def mse_loss_pallas(x, y, *, block_bytes: int = TARGET_BLOCK_BYTES,
                    small_input_xla_fallback_elems: int = 0):
    """Exact equivalent of torch.nn.functional.mse_loss(x, y) (mean reduction).

    block_bytes: per-input VMEM block budget for the streaming path.
    small_input_xla_fallback_elems: if > 0, inputs smaller than this many
      elements bypass Pallas entirely (XLA fusion beats pallas_call launch
      overhead for tiny feature maps; e.g. pass ~131072 in production).
    """
    assert x.shape == y.shape, "x and y must have identical shapes"
    n_elems = x.size
    out_dtype = jnp.promote_types(x.dtype, y.dtype)

    if n_elems == 0:
        return jnp.full((), jnp.nan, dtype=out_dtype)

    if n_elems < small_input_xla_fallback_elems:
        d = x.astype(jnp.float32) - y.astype(jnp.float32)
        return jnp.mean(d * d).astype(out_dtype)

    itemsize = jnp.dtype(x.dtype).itemsize
    packing = max(1, 4 // itemsize)          # sublane packing for <32-bit dtypes
    xf = x.reshape(-1)
    yf = y.reshape(-1)

    large = n_elems * itemsize >= block_bytes
    if large:
        # Streaming path: lane alignment only; the row tail is masked in-kernel
        # (no padded copies of large tensors on the 128-aligned common case).
        row_tile = block_bytes // (LANES * itemsize)
        row_align = SUBLANES * packing
        row_tile = max(row_align, (row_tile // row_align) * row_align)
        align = LANES
    else:
        # Small path: single full-extent block, padded to (8|16|32, 128)
        # granularity so sub-32-bit dtypes keep clean sublane-packed layouts.
        align = SUBLANES * packing * LANES
        row_tile = None

    pad = (-n_elems) % align
    if pad:
        # Zero-padding BOTH tensors contributes 0 to the squared-diff sum.
        xf = jnp.pad(xf, (0, pad))
        yf = jnp.pad(yf, (0, pad))

    rows = xf.size // LANES
    if row_tile is None:
        row_tile = rows
    x2d = xf.reshape(rows, LANES)
    y2d = yf.reshape(rows, LANES)

    num_blocks = pl.cdiv(rows, row_tile)
    needs_tail_mask = num_blocks * row_tile > rows

    # 2-way slice split only where it genuinely shards (dual-TC v7x) and only
    # when every (p, i) maps to a distinct block (no clamped duplicate DMAs).
    if _num_tensorcores_per_chip() >= 2 and num_blocks >= 4 and num_blocks % 2 == 0:
        num_slices = 2
        dim_sems = (pltpu.CORE_PARALLEL, pltpu.ARBITRARY)
    else:
        num_slices = 1
        dim_sems = ("arbitrary", "arbitrary")
    bps = num_blocks // num_slices           # blocks per slice, exact

    def in_map(p, i):
        return (p * bps + i, 0)

    kernel = functools.partial(
        _ssd_kernel, row_tile=row_tile, rows=rows, bps=bps,
        num_blocks=num_blocks, needs_tail_mask=needs_tail_mask)

    vmem_limit = max(VMEM_LIMIT_BYTES,
                     4 * row_tile * LANES * itemsize + (4 << 20))

    partials = pl.pallas_call(
        kernel,
        out_shape=jax.ShapeDtypeStruct((num_slices, SUBLANES, LANES), jnp.float32),
        grid_spec=pltpu.PrefetchScalarGridSpec(
            num_scalar_prefetch=0,
            grid=(num_slices, bps),
            in_specs=[
                pl.BlockSpec((row_tile, LANES), in_map),
                pl.BlockSpec((row_tile, LANES), in_map),
            ],
            out_specs=pl.BlockSpec((1, SUBLANES, LANES), lambda p, i: (p, 0, 0)),
        ),
        compiler_params=pltpu.CompilerParams(
            dimension_semantics=dim_sems,
            vmem_limit_bytes=vmem_limit,
        ),
    )(x2d, y2d)

    # Tiny epilogue in XLA: cross-lane reduce of <= 2*8*128 partials + 1/N scale.
    return (jnp.sum(partials) * jnp.float32(1.0 / n_elems)).astype(out_dtype)


if __name__ == "__main__":
    key = jax.random.PRNGKey(0)
    kx, ky = jax.random.split(key)

    # NCHW feature maps, as the PyTorch ContentLoss would receive.
    x = jax.random.normal(kx, (2, 4, 16, 16), dtype=jnp.float32)
    y = jax.random.normal(ky, (2, 4, 16, 16), dtype=jnp.float32)
    loss = mse_loss_pallas(x, y)
    jax.block_until_ready(loss)
    ref = jnp.mean((x - y) ** 2)
    assert jnp.allclose(loss, ref, rtol=1e-5, atol=1e-6), (loss, ref)

    # Ragged (non-128-aligned) small case exercising the padded single-block path.
    xr = jax.random.normal(kx, (3, 5, 7, 9), dtype=jnp.float32)
    yr = jax.random.normal(ky, (3, 5, 7, 9), dtype=jnp.float32)
    loss_r = mse_loss_pallas(xr, yr)
    jax.block_until_ready(loss_r)
    ref_r = jnp.mean((xr - yr) ** 2)
    assert jnp.allclose(loss_r, ref_r, rtol=1e-5, atol=1e-6), (loss_r, ref_r)

    # Multi-block streaming path with a masked partial tail block, exercised at
    # small size by shrinking the per-block byte budget.
    xs = jax.random.normal(kx, (2, 8, 32, 33), dtype=jnp.float32)
    ys = jax.random.normal(ky, (2, 8, 32, 33), dtype=jnp.float32)
    loss_s = mse_loss_pallas(xs, ys, block_bytes=64 * 1024)
    jax.block_until_ready(loss_s)
    ref_s = jnp.mean((xs - ys) ** 2)
    assert jnp.allclose(loss_s, ref_s, rtol=1e-5, atol=1e-6), (loss_s, ref_s)

    print("KERNEL_OK")
</pallas_src>

<mosaic_0001>
module attributes {stable_mosaic.version = 11 : i64} {
  func.func @_ssd_kernel(%arg0: i32, %arg1: i32, %arg2: memref<16x128xf32, #tpu.memory_space<vmem>>, %arg3: memref<16x128xf32, #tpu.memory_space<vmem>>, %arg4: memref<1x8x128xf32, #tpu.memory_space<vmem>>) attributes {dimension_semantics = [#tpu.dimension_semantics<arbitrary>, #tpu.dimension_semantics<arbitrary>], iteration_bounds = array<i64: 1, 1>, scalar_prefetch = 0 : i64, scratch_operands = 0 : i64, tpu.core_type = #tpu.core_type<tc>, window_params = [{transform_indices = @transform_0, window_bounds = array<i64: 16, 128>}, {transform_indices = @transform_1, window_bounds = array<i64: 16, 128>}, {transform_indices = @transform_2, window_bounds = array<i64: 1, 8, 128>}]} {
    %c0_i32 = arith.constant 0 : i32
    %0 = arith.cmpi eq, %arg1, %c0_i32 : i32
    %1 = arith.extui %0 : i1 to i32
    %c0_i32_0 = arith.constant 0 : i32
    %2 = arith.cmpi ne, %1, %c0_i32_0 : i32
    scf.if %2 {
      %cst_10 = arith.constant 0.000000e+00 : f32
      %15 = vector.broadcast %cst_10 : f32 to vector<1x8x128xf32>
      %c0_11 = arith.constant 0 : index
      %c0_12 = arith.constant 0 : index
      %c0_13 = arith.constant 0 : index
      %16 = vector.load %arg4[%c0_11, %c0_12, %c0_13] : memref<1x8x128xf32, #tpu.memory_space<vmem>>, vector<1x8x128xf32>
      tpu.vector_store %arg4[%c0_11, %c0_12, %c0_13], %15 {strides = array<i32>} : memref<1x8x128xf32, #tpu.memory_space<vmem>>, vector<1x8x128xf32>,
    } else {
    }
    %c0 = arith.constant 0 : index
    %c0_1 = arith.constant 0 : index
    %3 = vector.load %arg2[%c0, %c0_1] : memref<16x128xf32, #tpu.memory_space<vmem>>, vector<16x128xf32>
    %c0_2 = arith.constant 0 : index
    %c0_3 = arith.constant 0 : index
    %4 = vector.load %arg3[%c0_2, %c0_3] : memref<16x128xf32, #tpu.memory_space<vmem>>, vector<16x128xf32>
    %5 = arith.subf %3, %4 : vector<16x128xf32>
    %6 = arith.mulf %5, %5 : vector<16x128xf32>
    %c0_4 = arith.constant 0 : index
    %c0_5 = arith.constant 0 : index
    %c0_6 = arith.constant 0 : index
    %7 = vector.load %arg4[%c0_4, %c0_5, %c0_6] : memref<1x8x128xf32, #tpu.memory_space<vmem>>, vector<1x8x128xf32>
    %8 = vector.shape_cast %7 : vector<1x8x128xf32> to vector<8x128xf32>
    %9 = vector.shape_cast %6 : vector<16x128xf32> to vector<2x8x128xf32>
    %cst = arith.constant dense<0.000000e+00> : vector<8x128xf32>
    %10 = vector.multi_reduction <add>, %9, %cst [0] : vector<2x8x128xf32> to vector<8x128xf32>
    %11 = arith.addf %8, %10 : vector<8x128xf32>
    %c0_7 = arith.constant 0 : index
    %c0_8 = arith.constant 0 : index
    %c0_9 = arith.constant 0 : index
    %12 = vector.load %arg4[%c0_7, %c0_8, %c0_9] : memref<1x8x128xf32, #tpu.memory_space<vmem>>, vector<1x8x128xf32>
    %13 = vector.shape_cast %12 : vector<1x8x128xf32> to vector<8x128xf32>
    %14 = vector.shape_cast %11 : vector<8x128xf32> to vector<1x8x128xf32>
    tpu.vector_store %arg4[%c0_7, %c0_8, %c0_9], %14 {strides = array<i32>} : memref<1x8x128xf32, #tpu.memory_space<vmem>>, vector<1x8x128xf32>,
    return
  }
  func.func @transform_0(%arg0: i32, %arg1: i32) -> (i32, i32) {
    %c1_i32 = arith.constant 1 : i32
    %0 = arith.muli %arg0, %c1_i32 : i32
    %1 = arith.addi %0, %arg1 : i32
    %c0_i32 = arith.constant 0 : i32
    %c0_i32_0 = arith.constant 0 : i32
    return %1, %c0_i32 : i32, i32
  }
  func.func @transform_1(%arg0: i32, %arg1: i32) -> (i32, i32) {
    %c1_i32 = arith.constant 1 : i32
    %0 = arith.muli %arg0, %c1_i32 : i32
    %1 = arith.addi %0, %arg1 : i32
    %c0_i32 = arith.constant 0 : i32
    %c0_i32_0 = arith.constant 0 : i32
    return %1, %c0_i32 : i32, i32
  }
  func.func @transform_2(%arg0: i32, %arg1: i32) -> (i32, i32, i32) {
    %c0_i32 = arith.constant 0 : i32
    %c0_i32_0 = arith.constant 0 : i32
    %c0_i32_1 = arith.constant 0 : i32
    return %arg0, %c0_i32, %c0_i32_0 : i32, i32, i32
  }
}

</mosaic_0001>

<bundles_post_ra>
// kernel: tpu_custom_call.1
= control target key start
LH: loop header
LB: loop body
LE: loop exit
PB: predicated region body
PF: predicated region fallthrough
CT: control target
= control target key end

     0   :  { %7 = vsyncpa [#allocation3], 0  ;;  %s204_s0 = inlined_call_operand.hbm [shape: f32[16,128], index: 0, kind: input, shape index: {}]   ;;  %s205_s1 = inlined_call_operand.hbm [shape: f32[16,128], index: 1, kind: input, shape index: {}]   ;;  %s206_s2 = inlined_call_operand.hbm [shape: f32[1,8,128], index: 2, kind: output, shape index: {}]  }
   0x1   :  { %8 = vsyncpa [#allocation6], 0 }
   0x2   :  { %9 = vsyncpa [#allocation4], 0  ;;  %s18_s11 = sshll.u32 %s204_s0, 4  ;;  %s175_s12 = smov [#allocation2]   ;;  %s19_s11 = int_to_ptr.hbm [resolvable:$true] %s18_s11 }
   0x3   :  { %s20_s13 = sshll.u32 %s175_s12, 4  ;;  %s35_s16 = sshll.u32 %s205_s1, 4  ;;  %s21_s13 = int_to_ptr.vmem [resolvable:$true] %s20_s13  ;;  %s36_s16 = int_to_ptr.hbm [resolvable:$true] %s35_s16 }
   0x4   :  { %s176_s17 = smov 128   ;;  %s177_s18 = smov 8  }
   0x5   :  { %26 = dma.hbm_to_vmem [thread:$0]  %s19_s11, 256, %s21_s13, [#allocation3], %s176_s17, %s176_s17, %s177_s18  }
   0x6   :  { %s178_s19 = smov [#allocation5]  }
   0x7   :  { %s37_s20 = sshll.u32 %s178_s19, 4  ;;  %s38_s20 = int_to_ptr.vmem [resolvable:$true] %s37_s20 }
   0x8   :  { %43 = dma.hbm_to_vmem [thread:$0]  %s36_s16, 256, %s38_s20, [#allocation6], %s176_s17, %s176_s17, %s177_s18  }
   0x9   :  { %169 = dma.done.wait [#allocation3], 256  }
   0xa   :  { %170 = vsyncadd [#allocation3], 4294967040 }
   0xb   :  { %171 = dma.done.wait [#allocation6], 256  }
   0xc   :  { %172 = vsyncadd [#allocation6], 4294967040  ;;  %v61_v0 = vld [vmem:[#allocation2] sm:$0xff]  ;;  %v62_v1 = vld [vmem:[#allocation2 + $0x8] sm:$0xff]  ;;  %s179_s0 = smov [#allocation7]   ;;  %s80_s23 = sshll.u32 %s206_s2, 4  ;;  %s81_s23 = int_to_ptr.hbm [resolvable:$true] %s80_s23 }
   0xd   :  { %v63_v2 = vld [vmem:[#allocation5] sm:$0xff]  ;;  %v64_v3 = vld [vmem:[#allocation5 + $0x8] sm:$0xff]  ;;  %s78_s1 = sshll.u32 %s179_s0, 4  ;;  %s79_s1 = int_to_ptr.vmem [resolvable:$true] %s78_s1 }
   0xe   :  { %v65_v4 = vsub.f32 %v61_v0, %v63_v2  ;;  %v66_v5 = vsub.f32 %v62_v1, %v64_v3 }
  0x10   :  { %v67_v6 = vmul.f32 %v65_v4, %v65_v4  ;;  %v68_v7 = vmul.f32 %v66_v5, %v66_v5 }
  0x12   :  { %v70_v8 = vadd.f32 %v68_v7, %v67_v6 }
  0x14   :  { %72 = vst [vmem:[#allocation7] sm:$0xff] %v70_v8 }
  0x15   :  { %83 = dma.vmem_to_hbm [thread:$0]  %s79_s1, 128, %s81_s23, [#allocation4]  }
  0x16   :  { %173 = dma.done.wait [#allocation4], 128  }
  0x17   :  { %174 = vsyncadd [#allocation4], 4294967168 }
  0x18   :  { %88 = vsyncpa [#allocation3], 1 }
  0x19   :  { %89 = vsyncpa [#allocation6], 1 }
  0x1a   :  { %90 = vsyncpa [#allocation4], 1 }

</bundles_post_ra>
